<compile_context>
chip_gen: v7x
topology: tpu7x:2x2x1
jax: 0.10.0
libtpu: 0.0.40
codegen_flags: <defaults>
</compile_context>

<pallas_src>
import jax
import jax.numpy as jnp
from jax.experimental import pallas as pl
from jax.experimental.pallas import tpu as pltpu


def _round_up(x, m):
    return (x + m - 1) // m * m


def _ceil_div(a, b):
    return -(-a // b)


# ----------------------------------------------------------------------------
# Pallas kernel: one fused MXU matmul + f32 epilogue per lane-dense edge tile.
#   x_ref     : [tile_r, g*2D]   (g edges packed per row, [src‖dst] per edge)
#   w_ref     : [g*2D, g*H]      (block-diagonal packed fused weight)
#   scale_ref : [1, g*H]         (BatchNorm eval scale, f32)
#   b_ref     : [1, g*H]         (fused bias: conv_b, b2, b4, BN shift, f32)
#   o_ref     : [tile_r, g*H]    (lane-dense output, >= 128 lanes when H<128)
# ----------------------------------------------------------------------------
def merg_edge_kernel(x_ref, w_ref, scale_ref, b_ref, o_ref):
    acc = jnp.dot(x_ref[...], w_ref[...], preferred_element_type=jnp.float32)
    acc = acc * scale_ref[...] + b_ref[...]
    o_ref[...] = jnp.maximum(acc, 0.0).astype(o_ref.dtype)


# ----------------------------------------------------------------------------
# Host-side (parameter-only) folding of the linear pipeline.
#
#   conv[m,k]  = cb + sum_t cw[0,t]*src_pad[m,k+t-1] + cw[1,t]*dst_pad[m,k+t-1]
#   lr_e_local = conv @ w2 + b2
#   lr_e_glob  = dst  @ w4 + b4           (index_edge == emb_h[dst], see TODO)
#   lr_e       = relu( BN_eval(lr_e_local + lr_e_glob) )
#
# sum_k src_pad[m,k+t-1] * w2[k,:] == src[m,:] @ shift_t(w2)  (Conv1d padding
# encoded as zero rows), so everything collapses to
#   relu( (src @ W_src + dst @ W_dst + bias_pre) * bn_scale + bn_shift ).
# BN scale stays out of the weight (applied in the f32 epilogue).
# ----------------------------------------------------------------------------
def _fold_parameters(params):
    cw = params["conv_w"].astype(jnp.float32)   # [2, 3]
    cb = params["conv_b"].astype(jnp.float32)   # [1]
    w2 = params["w2"].astype(jnp.float32)       # [D, H]
    w4 = params["w4"].astype(jnp.float32)       # [D, H]  (in_dim == hidden_dim)
    b2 = params["b2"].astype(jnp.float32)       # [H]
    b4 = params["b4"].astype(jnp.float32)       # [H]
    D, H = w2.shape

    zrow = jnp.zeros((1, H), jnp.float32)
    w2_up = jnp.concatenate([w2[1:], zrow], axis=0)    # row j -> w2[j+1] (tap t=0)
    w2_dn = jnp.concatenate([zrow, w2[:-1]], axis=0)   # row j -> w2[j-1] (tap t=2)

    w_src = cw[0, 0] * w2_up + cw[0, 1] * w2 + cw[0, 2] * w2_dn
    w_dst = cw[1, 0] * w2_up + cw[1, 1] * w2 + cw[1, 2] * w2_dn + w4
    bias_pre = cb[0] * jnp.sum(w2, axis=0) + b2 + b4

    scale = params["bn_gamma"] / jnp.sqrt(params["bn_var"] + 1e-5)
    shift = params["bn_beta"] - params["bn_mean"] * scale

    w_all = jnp.concatenate([w_src, w_dst], axis=0)     # [2D, H], BN-scale-free
    b_all = bias_pre * scale + shift                    # [H]
    return w_all, scale, b_all


def _vmem_capacity_bytes():
    try:
        info = pltpu.get_tpu_info()
        cap = int(getattr(info, "vmem_capacity_bytes", 0) or 0)
        if cap > 0:
            return cap
    except Exception:
        pass
    return 64 * 1024 * 1024   # conservative (v7x-sized) fallback


# ----------------------------------------------------------------------------
# Forward wrapper
# ----------------------------------------------------------------------------
def merg_forward(emb_h, h, src_idx, dst_idx, params, *,
                 tile_edges=None,
                 compute_dtype=jnp.float32,
                 out_dtype=jnp.float32):
    """MERG forward (eval mode). Returns lr_e with shape [M, H].

    compute_dtype: dtype of the gathered features and of W_all (MXU operands).
    out_dtype:     dtype of the kernel output (HBM writeback).
    Accumulation and the BatchNorm/bias/ReLU epilogue are always float32.
    """
    M = int(src_idx.shape[0])
    D = int(emb_h.shape[1])
    H = int(params["w2"].shape[1])
    K = 2 * D

    # ---- plain-JAX glue ----------------------------------------------------
    # global_layers (identity, see TODO) + dgl.mean_nodes -> global graph emb,
    # which feeds only the (identity) CrossT FAM layer, hence unused downstream.
    global_g = jnp.mean(h, axis=0)
    del global_g

    # Lane-dense output packing: g edges per 128-lane output row when H < 128.
    if H < 128 and 128 % H == 0:
        g = 128 // H
    else:
        g = 1   # TODO(synk): no lane repack when H does not divide 128

    in_bytes = jnp.dtype(compute_dtype).itemsize
    out_bytes = jnp.dtype(out_dtype).itemsize

    # ---- VMEM-budget-driven tile size (per generation) ----------------------
    cap = _vmem_capacity_bytes()
    # Resident (constant-index) blocks are still double-buffered by default.
    resident = 2 * ((g * K) * (g * H) * in_bytes + 2 * g * H * 4)
    per_row = 2 * (g * K * in_bytes + g * H * out_bytes)   # dbl-buffered in + out
    budget = int(0.75 * cap)

    if tile_edges is None:
        tile_r = (budget - resident) // per_row
        tile_r = max(8, min(2048, (tile_r // 8) * 8))
    else:
        tile_r = _round_up(max(_ceil_div(int(tile_edges), g), 8), 8)

    # never tile bigger than the (padded) problem
    tile_r = min(tile_r, _round_up(_ceil_div(M, g), 8))

    # keep >= 2 grid steps so v7x's two TensorCores both get work
    def _steps(tr):
        return _round_up(M, tr * g) // (tr * g)
    while _steps(tile_r) < 2 and tile_r > 8:
        tile_r = _round_up(max(tile_r // 2, 8), 8)

    tile_m = tile_r * g
    M_pad = _round_up(M, tile_m)
    pad = M_pad - M

    # ---- single fused gather, narrow-dtype cast BEFORE the gather -----------
    src_idx_p = jnp.pad(src_idx, (0, pad))        # padded with node 0 (valid row)
    dst_idx_p = jnp.pad(dst_idx, (0, pad))
    emb_c = emb_h.astype(compute_dtype)
    idx_pair = jnp.stack([src_idx_p, dst_idx_p], axis=1)       # [M_pad, 2]
    # One gather -> [M_pad, 2, D]; row-major repack to g edges per row.
    x = emb_c[idx_pair].reshape(M_pad // g, g * K)             # [rows, g*2D]

    # ---- parameters: fold + (optional) block-diagonal lane packing ----------
    w_all, scale, b_all = _fold_parameters(params)
    w_all = w_all.astype(compute_dtype)                        # [2D, H]
    if g > 1:
        w_p = jnp.zeros((g * K, g * H), compute_dtype)
        for kk in range(g):
            w_p = w_p.at[kk * K:(kk + 1) * K, kk * H:(kk + 1) * H].set(w_all)
        scale_p = jnp.tile(scale, g)[None, :].astype(jnp.float32)
        b_p = jnp.tile(b_all, g)[None, :].astype(jnp.float32)
    else:
        w_p = w_all
        scale_p = scale[None, :].astype(jnp.float32)
        b_p = b_all[None, :].astype(jnp.float32)

    need = resident + per_row * tile_r
    vmem_limit = int(min(int(0.9 * cap), max(32 * 1024 * 1024, 2 * need)))
    vmem_limit = min(vmem_limit, 128 * 1024 * 1024)

    grid = (M_pad // tile_m,)
    out = pl.pallas_call(
        merg_edge_kernel,
        out_shape=jax.ShapeDtypeStruct((M_pad // g, g * H), out_dtype),
        grid=grid,
        in_specs=[
            pl.BlockSpec((tile_r, g * K), lambda i: (i, 0)),   # fused [src‖dst]
            pl.BlockSpec((g * K, g * H), lambda i: (0, 0)),    # packed weight
            pl.BlockSpec((1, g * H), lambda i: (0, 0)),        # BN scale (f32)
            pl.BlockSpec((1, g * H), lambda i: (0, 0)),        # fused bias (f32)
        ],
        out_specs=pl.BlockSpec((tile_r, g * H), lambda i: (i, 0)),
        compiler_params=pltpu.CompilerParams(
            dimension_semantics=("parallel",),
            vmem_limit_bytes=vmem_limit,
        ),
    )(x, w_p, scale_p, b_p)

    return out.reshape(M_pad, H)[:M]


# ----------------------------------------------------------------------------
# Pure-JAX reference (follows the original module op order)
# ----------------------------------------------------------------------------
def merg_reference(emb_h, h, src_idx, dst_idx, params):
    D = emb_h.shape[1]
    src_feat = emb_h[src_idx]
    dst_feat = emb_h[dst_idx]
    edge = jnp.stack([src_feat, dst_feat], axis=1)            # [M, 2, D]
    edge_pad = jnp.pad(edge, ((0, 0), (0, 0), (1, 1)))
    conv = params["conv_b"][0]
    for c in range(2):
        for t in range(3):
            conv = conv + params["conv_w"][c, t] * edge_pad[:, c, t:t + D]
    local = conv @ params["w2"] + params["b2"]
    glob = dst_feat @ params["w4"] + params["b4"]
    lr_e = local + glob
    bn_scale = params["bn_gamma"] / jnp.sqrt(params["bn_var"] + 1e-5)
    bn_shift = params["bn_beta"] - params["bn_mean"] * bn_scale
    lr_e = lr_e * bn_scale + bn_shift
    return jnp.maximum(lr_e, 0.0)


if __name__ == "__main__":
    # Small shapes: N nodes, M edges, in_dim == hidden_dim (required by module).
    N, D, H, M = 16, 32, 32, 200
    key = jax.random.PRNGKey(0)
    k = jax.random.split(key, 10)

    emb_h = jax.random.normal(k[0], (N, D), jnp.float32)      # g.ndata['emb_h']
    h = jax.random.normal(k[1], (N, H), jnp.float32)          # node input
    src_idx = jax.random.randint(k[2], (M,), 0, N, jnp.int32)
    dst_idx = jax.random.randint(k[3], (M,), 0, N, jnp.int32)

    def xavier(key, shape):
        fan_in, fan_out = shape[0], shape[1]
        lim = (6.0 / (fan_in + fan_out)) ** 0.5
        return jax.random.uniform(key, shape, jnp.float32, -lim, lim)

    params = {
        # Conv1d(2 -> 1, kernel=3, padding=1): weight [out=1, in=2, k=3] -> (2,3)
        "conv_w": jax.random.normal(k[4], (2, 3), jnp.float32) * 0.2,
        "conv_b": jnp.array([0.05], jnp.float32),
        # edge_proj2: Linear(in_dim, hidden) stored transposed [D, H]
        "w2": xavier(k[5], (D, H)),
        "b2": jnp.zeros((H,), jnp.float32),
        # edge_proj4: Linear(hidden, hidden) stored transposed [H, H]
        "w4": xavier(k[6], (H, H)),
        "b4": jnp.zeros((H,), jnp.float32),
        # BatchNorm1d(hidden) eval-mode parameters / running stats
        "bn_gamma": jnp.ones((H,), jnp.float32),
        "bn_beta": jnp.zeros((H,), jnp.float32),
        "bn_mean": jnp.zeros((H,), jnp.float32),
        "bn_var": jnp.ones((H,), jnp.float32),
    }

    ref = merg_reference(emb_h, h, src_idx, dst_idx, params)

    # f32 path: exact parity with the reference.
    out = merg_forward(emb_h, h, src_idx, dst_idx, params)
    out = jax.block_until_ready(out)
    assert out.shape == (M, H)
    assert jnp.allclose(out, ref, atol=1e-4, rtol=1e-4), "f32 mismatch vs reference"

    # bf16 MXU-operand + bf16-output path (bandwidth win on every generation),
    # f32 accumulation / epilogue.
    out_bf16 = merg_forward(emb_h, h, src_idx, dst_idx, params,
                            compute_dtype=jnp.bfloat16, out_dtype=jnp.bfloat16)
    out_bf16 = jax.block_until_ready(out_bf16)
    assert out_bf16.shape == (M, H)
    assert jnp.allclose(out_bf16.astype(jnp.float32), ref, atol=2e-1, rtol=2e-1), \
        "bf16 mismatch vs reference"

    print("KERNEL_OK")
</pallas_src>

<mosaic_0001>
module attributes {stable_mosaic.version = 11 : i64} {
  func.func @merg_edge_kernel(%arg0: i32, %arg1: memref<32x256xf32, #tpu.memory_space<vmem>>, %arg2: memref<256x128xf32, #tpu.memory_space<vmem>>, %arg3: memref<1x128xf32, #tpu.memory_space<vmem>>, %arg4: memref<1x128xf32, #tpu.memory_space<vmem>>, %arg5: memref<32x128xf32, #tpu.memory_space<vmem>>) attributes {dimension_semantics = [#tpu.dimension_semantics<parallel>], iteration_bounds = array<i64: 2>, scalar_prefetch = 0 : i64, scratch_operands = 0 : i64, tpu.core_type = #tpu.core_type<tc>, window_params = [{transform_indices = @transform_0, window_bounds = array<i64: 32, 256>}, {pipeline_mode = #tpu.pipeline_mode<synchronous>, transform_indices = @transform_1, window_bounds = array<i64: 256, 128>}, {pipeline_mode = #tpu.pipeline_mode<synchronous>, transform_indices = @transform_2, window_bounds = array<i64: 1, 128>}, {pipeline_mode = #tpu.pipeline_mode<synchronous>, transform_indices = @transform_3, window_bounds = array<i64: 1, 128>}, {transform_indices = @transform_4, window_bounds = array<i64: 32, 128>}]} {
    %c0 = arith.constant 0 : index
    %c0_0 = arith.constant 0 : index
    %0 = vector.load %arg1[%c0, %c0_0] : memref<32x256xf32, #tpu.memory_space<vmem>>, vector<32x256xf32>
    %c0_1 = arith.constant 0 : index
    %c0_2 = arith.constant 0 : index
    %1 = vector.load %arg2[%c0_1, %c0_2] : memref<256x128xf32, #tpu.memory_space<vmem>>, vector<256x128xf32>
    %cst = arith.constant dense<0.000000e+00> : vector<32x128xf32>
    %2 = tpu.matmul %0, %1, %cst {dimension_numbers = #tpu.dot_dimension_numbers<[1], [0], [0], [1], [0, 0, 1, 1], [], []>} : vector<32x256xf32>, vector<256x128xf32>, vector<32x128xf32> -> vector<32x128xf32>
    %c0_3 = arith.constant 0 : index
    %c0_4 = arith.constant 0 : index
    %3 = vector.load %arg3[%c0_3, %c0_4] : memref<1x128xf32, #tpu.memory_space<vmem>>, vector<1x128xf32>
    %4 = vector.broadcast %3 : vector<1x128xf32> to vector<32x128xf32>
    %5 = arith.mulf %2, %4 : vector<32x128xf32>
    %c0_5 = arith.constant 0 : index
    %c0_6 = arith.constant 0 : index
    %6 = vector.load %arg4[%c0_5, %c0_6] : memref<1x128xf32, #tpu.memory_space<vmem>>, vector<1x128xf32>
    %7 = vector.broadcast %6 : vector<1x128xf32> to vector<32x128xf32>
    %8 = arith.addf %5, %7 : vector<32x128xf32>
    %cst_7 = arith.constant 0.000000e+00 : f32
    %9 = vector.broadcast %cst_7 : f32 to vector<32x128xf32>
    %10 = arith.maximumf %8, %9 : vector<32x128xf32>
    %c0_8 = arith.constant 0 : index
    %c0_9 = arith.constant 0 : index
    %11 = vector.load %arg5[%c0_8, %c0_9] : memref<32x128xf32, #tpu.memory_space<vmem>>, vector<32x128xf32>
    tpu.vector_store %arg5[%c0_8, %c0_9], %10 {strides = array<i32>} : memref<32x128xf32, #tpu.memory_space<vmem>>, vector<32x128xf32>,
    return
  }
  func.func @transform_0(%arg0: i32) -> (i32, i32) {
    %c0_i32 = arith.constant 0 : i32
    %c0_i32_0 = arith.constant 0 : i32
    return %arg0, %c0_i32 : i32, i32
  }
  func.func @transform_1(%arg0: i32) -> (i32, i32) {
    %c0_i32 = arith.constant 0 : i32
    %c0_i32_0 = arith.constant 0 : i32
    %c0_i32_1 = arith.constant 0 : i32
    return %c0_i32, %c0_i32_0 : i32, i32
  }
  func.func @transform_2(%arg0: i32) -> (i32, i32) {
    %c0_i32 = arith.constant 0 : i32
    %c0_i32_0 = arith.constant 0 : i32
    %c0_i32_1 = arith.constant 0 : i32
    return %c0_i32, %c0_i32_0 : i32, i32
  }
  func.func @transform_3(%arg0: i32) -> (i32, i32) {
    %c0_i32 = arith.constant 0 : i32
    %c0_i32_0 = arith.constant 0 : i32
    %c0_i32_1 = arith.constant 0 : i32
    return %c0_i32, %c0_i32_0 : i32, i32
  }
  func.func @transform_4(%arg0: i32) -> (i32, i32) {
    %c0_i32 = arith.constant 0 : i32
    %c0_i32_0 = arith.constant 0 : i32
    return %arg0, %c0_i32 : i32, i32
  }
}

</mosaic_0001>

<bundles_post_ra>
// kernel: tpu_custom_call.1
= control target key start
LH: loop header
LB: loop body
LE: loop exit
PB: predicated region body
PF: predicated region fallthrough
CT: control target
= control target key end

     0   :  { %9 = vsyncpa [#allocation3], 0  ;;  %s1045_s0 = inlined_call_operand.hbm [shape: f32[64,256], index: 0, kind: input, shape index: {}]   ;;  %s1046_s1 = inlined_call_operand.hbm [shape: f32[256,128], index: 1, kind: input, shape index: {}]   ;;  %s1047_s2 = inlined_call_operand.vmem [shape: f32[1,128], index: 2, kind: input, shape index: {}]   ;;  %s1048_s3 = inlined_call_operand.vmem [shape: f32[1,128], index: 3, kind: input, shape index: {}]   ;;  %s1049_s4 = inlined_call_operand.hbm [shape: f32[64,128], index: 4, kind: output, shape index: {}]  }
   0x1   :  { %11 = vsyncpa [#allocation3 + $0x1], 0 }
   0x2   :  { %12 = vsyncpa [#allocation6], 0 }
   0x3   :  { %13 = vsyncpa [#allocation4], 0 }
   0x4   :  { %15 = vsyncpa [#allocation4 + $0x1], 0  ;;  %s827_s15 = smov 0   ;;  %s829_s16 = smov 0  }
   0x5   :  { %s831_s17 = smov 0   ;;  %s833_s18 = smov 0  }
   0x6 LB: > { %s848_s19 = sadd.s32 4294967295, %s791_s18   ;;  %s486_s20 = sadd.s32 4294967294, %s791_s18   ;;  %s791_s18 = sphi %s833_s18, %s1069_s18   ;;  %s787_s17 = sphi %s831_s17, %s1068_s17   ;;  %s783_s16 = sphi %s829_s16, %s1067_s16   ;;  %s779_s15 = sphi %s827_s15, %s1066_s15  }
   0x7   : > { %p41_p0 = scmp.ne.s32.totalorder %s783_s16, %s779_s15  ;;  %p1050_p1 = scmp.eq.s32.totalorder %s848_s19, 0 }
   0x8   : > { %p134_p3 = scmp.eq.s32.totalorder %s486_s20, 1  ;;  %p487_p5 = scmp.ge.s32.totalorder %s791_s18, 1 }
   0x9   : > { %p857_p4 = por %p1050_p1, %p41_p0  ;;  %p141_p7 = scmp.lt.s32.totalorder %s791_s18, 3 }
   0xa   : > { %p862_p6 = por %p134_p3, %p41_p0  ;;  %s793_s24 = smov [#allocation5]  }
   0xb   : > { %s1053_s21 = scalar_select %p857_p4, 1, 0 }
   0xc   : > { %s1054_s22 = scalar_select %p862_p6, 1, 0 }
   0xd   : > { %p867_p8 = pnand %p487_p5, %p141_p7  ;;  %s153_s25 = sshll.u32 %s793_s24, 4  ;;  %s871_s25 = int_to_ptr.vmem [resolvable:$true] %s153_s25 }
   0xe   : > { %s883_s27 = sadd.s32 1, %s791_s18   ;;  %s28_s28 = sadd.s32 1, %s787_s17 }
   0xf   : > { %s1055_s23 = scalar_select %p867_p8, 1, 0 }
  0x10   : > { %p608_p9 = pneg %p867_p8  ;;  %s25_s29 = ssub.s32 %s791_s18, %s883_s27 }
  0x11   : > { %s663_s6 = scalar_lea.hbm %s1046_s1, 4096 }
  0x12   : > { %p878_p11 = pnand %p608_p9, %p1050_p1  ;;  %p664_p12 = scmp.ne.s32.totalorder %s1046_s1, %s663_s6 }
  0x13   : > { %p670_p5 = scmp.lt.u32.totalorder %s663_s6, %s1046_s1 }
  0x14   : > { %p665_p13 = pneg %p878_p11 }
  0x16   : > { %p666_p0 = pnand %p665_p13, %p664_p12 }
  0x18   : > { %p667_p3 = pneg %p666_p0 }
  0x1a   : > { %p672_p7 = pnand %p670_p5, %p667_p3 }
  0x1c   : > { %675 = shalt.err (!%p672_p7)
}
  0x1d   : > { %s676_s11 = scalar_lea.vmem %s871_s25, 4096  ;;  %p684_p2 = scmp.lt.s32.totalorder %s871_s25, %s871_s25 }
  0x1e   : > { %p677_p9 = scmp.ne.s32.totalorder %s871_s25, %s676_s11  ;;  %p685_p6 = scmp.lt.s32.totalorder %s676_s11, %s676_s11 }
  0x20   : > { %p679_p10 = pnand %p677_p9, %p665_p13  ;;  %p686_p4 = por %p685_p6, %p684_p2 }
  0x22   : > { %p680_p1 = pneg %p679_p10 }
  0x24   : > { %p687_p8 = pnand %p686_p4, %p680_p1 }
  0x26   : > { %690 = shalt.err (!%p687_p8)
}
  0x27   : > { %s794_s12 = smov 128   ;;  %s795_s13 = smov 8  }
  0x28   : > { %611 = dma.hbm_to_vmem [thread:$0]  (!%p878_p11), %s1046_s1, 4096, %s871_s25, [#allocation6], %s794_s12, %s794_s12, %s795_s13  }
  0x29   : > { %p26_p2 = scmp.eq.s32.totalorder %s25_s29, 0  ;;  %p35_p1 = scmp.ne.s32.totalorder %s787_s17, %s783_s16 }
  0x2a   : > { %p36_p4 = scmp.eq.s32.totalorder %s791_s18, 0  ;;  %p621_p6 = scmp.lt.s32.totalorder %s791_s18, 2 }
  0x2b   : > { %s914_s24 = scalar_select %p26_p2, %s787_s17, %s28_s28  }
  0x2c   : > { %p37_p8 = por %p36_p4, %p35_p1  ;;  %p1057_p10 = scmp.eq.s32.totalorder %s848_s19, 1 }
  0x2d   : > { %s173_s5 = sand.u32 1, %s787_s17   ;;  %s506_s6 = sshll.u32 %s791_s18, 10 }
  0x2e   : > { %p918_p12 = por %p1057_p10, %p35_p1  ;;  %s490_s7 = sshll.u32 %s173_s5, 6 }
  0x2f   : > { %s927_s9 = scalar_lea.hbm %s1045_s0, %s506_s6  ;;  %s177_s25 = scalar_lea.vmem [#allocation2], %s490_s7 }
  0x30   : > { %s185_s28 = sshll.u32 %s177_s25, 4  ;;  %p929_p11 = pnand %p621_p6, %p37_p8  ;;  %s933_s28 = int_to_ptr.vmem [resolvable:$true] %s185_s28 }
  0x31   : > { %s935_s10 = scalar_lea.sflag [#allocation3], %s173_s5  ;;  %s691_s11 = scalar_lea.hbm %s927_s9, 1024 }
  0x32   : > { %p692_p13 = scmp.ne.s32.totalorder %s927_s9, %s691_s11  ;;  %p693_p0 = pneg %p929_p11 }
  0x33   : > { %s696_s14 = scalar_lea.hbm %s1045_s0, 2048  ;;  %p697_p7 = scmp.lt.u32.totalorder %s927_s9, %s1045_s0 }
  0x34   : > { %p694_p3 = pnand %p693_p0, %p692_p13  ;;  %p698_p9 = scmp.lt.u32.totalorder %s696_s14, %s691_s11 }
  0x35   : > { %p700_p1 = scmp.lt.u32.totalorder %s691_s11, %s927_s9 }
  0x36   : > { %p695_p5 = pneg %p694_p3  ;;  %p699_p2 = por %p698_p9, %p697_p7 }
  0x38   : > { %p701_p4 = por %p700_p1, %p699_p2 }
  0x3a   : > { %p702_p6 = pnand %p701_p4, %p695_p5 }
  0x3c   : > { %705 = shalt.err (!%p702_p6)
}
  0x3d   : > { %s706_s5 = scalar_lea.vmem %s933_s28, 1024  ;;  %s796_s7 = smov [#allocation2]  }
  0x3e   : > { %p707_p8 = scmp.ne.s32.totalorder %s933_s28, %s706_s5  ;;  %s711_s26 = sshll.u32 %s796_s7, 4  ;;  %s712_s26 = int_to_ptr.vmem [resolvable:$false] %s711_s26 }
  0x3f   : > { %s713_s8 = scalar_lea.vmem %s712_s26, 2048  ;;  %p714_p3 = scmp.lt.s32.totalorder %s933_s28, %s712_s26 }
  0x40   : > { %p709_p10 = pnand %p707_p8, %p693_p0  ;;  %p715_p7 = scmp.lt.s32.totalorder %s713_s8, %s706_s5 }
  0x42   : > { %p710_p13 = pneg %p709_p10  ;;  %p716_p9 = por %p715_p7, %p714_p3 }
  0x44   : > { %p717_p2 = pnand %p716_p9, %p710_p13 }
  0x46   : > { %720 = shalt.err (!%p717_p2)
}
  0x47   : > { %s797_s25 = smov 256   ;;  %s798_s11 = smov 16  }
  0x48   : > { %615 = dma.hbm_to_vmem [thread:$0]  (!%p929_p11), %s927_s9, 1024, %s933_s28, %s935_s10, %s797_s25, %s797_s25, %s798_s11  }
  0x49   : > { %p1060_p0 = scmp.ne.s32.totalorder %s1055_s23, 0 }
  0x4a   : > { %s966_s12 = sand.u32 (!%p1060_p0), 1, %s783_s16   ;;  %p1061_p5 = scmp.ne.s32.totalorder (!%p1060_p0), %s1053_s21, 0 }
  0x4b   : > { %197 = sbr.rel (%p1060_p0) target bundleno = 361 (0x169), region = 36  ;;  %s495_s13 = sshll.u32 (!%p1060_p0), %s966_s12, 6 }
  0x4c   : > { %s200_s14 = scalar_lea.sflag (!%p1060_p0), [#allocation3], %s966_s12  ;;  %s970_s20 = scalar_lea.vmem (!%p1060_p0), [#allocation2], %s495_s13 }
  0x52   : > { %766 = dma.done.wait (%p1061_p5), %s200_s14, 1024  }
  0x53   : > { %768 = vsyncadd (%p1061_p5), %s200_s14, 4294966272  ;;  %p1062_p11 = scmp.eq.s32.totalorder %s848_s19, 0 }
  0x55   : > { %770 = dma.done.wait (%p1062_p11), [#allocation6], 4096   ;;  %p1063_p1 = pmov %p1062_p11 }
  0x56   : > { %v258_v0 = vld [vmem:[#allocation5 + $0x80] sm:$0xff]  ;;  %v259_v1 = vld [vmem:[#allocation5 + $0x88] sm:$0xff]  ;;  %v260_v5 = vld [vmem:[#allocation5 + $0x90] sm:$0xff]  ;;  %s497_s9 = sshll.u32 %s966_s12, 5  ;;  %s507_s5 = sshll.u32 %s848_s19, 9 }
  0x57   : > { %772 = vsyncadd (%p1063_p1), [#allocation6], 4294963200  ;;  %v242_v2 = vld [vmem:[#allocation5] sm:$0xff]  ;;  %v552_v3 = vpack.c.bf16 %v259_v1, %v258_v0  ;;  %v243_v4 = vld [vmem:[#allocation5 + $0x8] sm:$0xff]  ;;  %s231_s10 = scalar_lea.vmem [#allocation7], %s497_s9  ;;  %s1001_s8 = scalar_lea.hbm %s1049_s4, %s507_s5 }
  0x58   : > { %v261_v6 = vld [vmem:[#allocation5 + $0x98] sm:$0xff]  ;;  %v554_v7 = vpack.c.bf16 %v243_v4, %v242_v2  ;;  %v244_v9 = vld [vmem:[#allocation5 + $0x10] sm:$0xff]  ;;  %v262_v11 = vld [vmem:[#allocation5 + $0xa0] sm:$0xff]  ;;  %s403_s6 = sshll.u32 %s231_s10, 4  ;;  %s390_s25 = scalar_lea.sflag [#allocation4], %s966_s12  ;;  %s996_s6 = int_to_ptr.vmem [resolvable:$true] %s403_s6 }
  0x59   : > { %v556_v8 = vpack.c.bf16 %v261_v6, %v260_v5  ;;  %v245_v10 = vld [vmem:[#allocation5 + $0x18] sm:$0xff]  ;;  %553 = vmatprep.subr.bf16.mxu0 %v552_v3  ;;  %584 = vmatprep.subr.bf16.mxu1 %v552_v3  ;;  %v263_v12 = vld [vmem:[#allocation5 + $0xa8] sm:$0xff]  ;;  %v246_v15 = vld [vmem:[#allocation5 + $0x20] sm:$0xff]  ;;  %s721_s19 = scalar_lea.vmem %s996_s6, 512  ;;  %s799_s11 = smov [#allocation7]  }
  0x5a   : > { %555 = vmatpush3.bf16.msra.mxu0 %v554_v7  ;;  %592 = vmatpush3.bf16.msra.mxu1 %v554_v7  ;;  %v558_v13 = vpack.c.bf16 %v245_v10, %v244_v9  ;;  %v560_v14 = vpack.c.bf16 %v263_v12, %v262_v11  ;;  %v247_v16 = vld [vmem:[#allocation5 + $0x28] sm:$0xff]  ;;  %v264_v17 = vld [vmem:[#allocation5 + $0xb0] sm:$0xff]  ;;  %v265_v18 = vld [vmem:[#allocation5 + $0xb8] sm:$0xff]  ;;  %p722_p4 = scmp.ne.s32.totalorder %s996_s6, %s721_s19  ;;  %s725_s13 = sshll.u32 %s799_s11, 4  ;;  %s726_s13 = int_to_ptr.vmem [resolvable:$false] %s725_s13 }
  0x5b   : > { %557 = vmatprep.subr.bf16.mxu0 %v556_v8  ;;  %585 = vmatprep.subr.bf16.mxu1 %v556_v8  ;;  %v562_v19 = vpack.c.bf16 %v247_v16, %v246_v15  ;;  %v564_v20 = vpack.c.bf16 %v265_v18, %v264_v17  ;;  %v248_v21 = vld [vmem:[#allocation5 + $0x30] sm:$0xff]  ;;  %v249_v22 = vld [vmem:[#allocation5 + $0x38] sm:$0xff]  ;;  %v266_v23 = vld [vmem:[#allocation5 + $0xc0] sm:$0xff]  ;;  %s727_s14 = scalar_lea.vmem %s726_s13, 1024  ;;  %p728_p10 = scmp.lt.s32.totalorder %s996_s6, %s726_s13 }
  0x5c   : > { %v267_v24 = vld [vmem:[#allocation5 + $0xc8] sm:$0xff]  ;;  %v566_v27 = vpack.c.bf16 %v249_v22, %v248_v21  ;;  %v250_v29 = vld [vmem:[#allocation5 + $0x40] sm:$0xff]  ;;  %v268_v31 = vld [vmem:[#allocation5 + $0xd0] sm:$0xff]  ;;  %p723_p6 = pnand %p722_p4, %p918_p12  ;;  %p729_p13 = scmp.lt.s32.totalorder %s727_s14, %s721_s19 }
  0x5d   : > { %v235_v25 = vld [vmem:[%s970_s20 + $0x8] sm:$0xff]  ;;  %v568_v28 = vpack.c.bf16 %v267_v24, %v266_v23  ;;  %v269_v32 = vld [vmem:[#allocation5 + $0xd8] sm:$0xff]  ;;  %v252_v35 = vld [vmem:[#allocation5 + $0x50] sm:$0xff] }
  0x5e   : > { %559 = vmatpush3.bf16.msra.mxu0 %v558_v13  ;;  %593 = vmatpush3.bf16.msra.mxu1 %v558_v13  ;;  %v239_v26 = vld [vmem:[%s970_s20 + $0x28] sm:$0xff]  ;;  %v572_v34 = vpack.c.bf16 %v269_v32, %v268_v31  ;;  %v253_v36 = vld [vmem:[#allocation5 + $0x58] sm:$0xff]  ;;  %v270_v37 = vld [vmem:[#allocation5 + $0xe0] sm:$0xff]  ;;  %p724_p8 = pneg %p723_p6  ;;  %p730_p3 = por %p729_p13, %p728_p10 }
  0x5f   : > { %561 = vmatprep.subr.bf16.mxu0 %v560_v14  ;;  %586 = vmatprep.subr.bf16.mxu1 %v560_v14  ;;  %v251_v30 = vld [vmem:[#allocation5 + $0x48] sm:$0xff]  ;;  %v574_v39 = vpack.c.bf16 %v253_v36, %v252_v35  ;;  %v254_v41 = vld [vmem:[#allocation5 + $0x60] sm:$0xff]  ;;  %v272_v43 = vld [vmem:[#allocation5 + $0xf0] sm:$0xff] }
  0x60   : > { %338 = vmatprep.mubr.f32.mxu0 %v235_v25  ;;  %348 = vmatprep.mubr.f32.mxu1 %v239_v26  ;;  %v570_v33 = vpack.c.bf16 %v251_v30, %v250_v29  ;;  %v271_v38 = vld [vmem:[#allocation5 + $0xe8] sm:$0xff]  ;;  %v273_v44 = vld [vmem:[#allocation5 + $0xf8] sm:$0xff]  ;;  %v256_v47 = vld [vmem:[#allocation5 + $0x70] sm:$0xff]  ;;  %p731_p7 = pnand %p730_p3, %p724_p8 }
  0x61   : > { %v576_v40 = vpack.c.bf16 %v271_v38, %v270_v37  ;;  %v255_v42 = vld [vmem:[#allocation5 + $0x68] sm:$0xff]  ;;  %v580_v46 = vpack.c.bf16 %v273_v44, %v272_v43  ;;  %v257_v48 = vld [vmem:[#allocation5 + $0x78] sm:$0xff]  ;;  %v234_v50 = vld [vmem:[%s970_s20] sm:$0xff] }
  0x62   : > { %563 = vmatpush3.bf16.msra.mxu0 %v562_v19  ;;  %594 = vmatpush3.bf16.msra.mxu1 %v562_v19  ;;  %v578_v45 = vpack.c.bf16 %v255_v42, %v254_v41  ;;  %v582_v49 = vpack.c.bf16 %v257_v48, %v256_v47  ;;  %v238_v51 = vld [vmem:[%s970_s20 + $0x20] sm:$0xff]  ;;  %v237_v52 = vld [vmem:[%s970_s20 + $0x18] sm:$0xff]  ;;  %v236_v54 = vld [vmem:[%s970_s20 + $0x10] sm:$0xff] }
  0x63   : > { %565 = vmatprep.subr.bf16.mxu0 %v564_v20  ;;  %587 = vmatprep.subr.bf16.mxu1 %v564_v20  ;;  %v241_v53 = vld [vmem:[%s970_s20 + $0x38] sm:$0xff]  ;;  %v240_v55 = vld [vmem:[%s970_s20 + $0x30] sm:$0xff]  ;;  %v498_v59 = vld [vmem:[%s1047_s2] ss:$0 sm:$0xff] }
  0x64   : > { %v499_v63 = vld [vmem:[%s1048_s3] ss:$0 sm:$0xff] }
  0x66   : > { %567 = vmatpush3.bf16.msra.mxu0 %v566_v27  ;;  %595 = vmatpush3.bf16.msra.mxu1 %v566_v27 }
  0x67   : > { %569 = vmatprep.subr.bf16.mxu0 %v568_v28  ;;  %588 = vmatprep.subr.bf16.mxu1 %v568_v28 }
  0x6a   : > { %571 = vmatpush3.bf16.msra.mxu0 %v570_v33  ;;  %596 = vmatpush3.bf16.msra.mxu1 %v570_v33 }
  0x6b   : > { %573 = vmatprep.subr.bf16.mxu0 %v572_v34  ;;  %589 = vmatprep.subr.bf16.mxu1 %v572_v34 }
  0x6e   : > { %575 = vmatpush3.bf16.msra.mxu0 %v574_v39  ;;  %597 = vmatpush3.bf16.msra.mxu1 %v574_v39 }
  0x6f   : > { %577 = vmatprep.subr.bf16.mxu0 %v576_v40  ;;  %590 = vmatprep.subr.bf16.mxu1 %v576_v40 }
  0x72   : > { %579 = vmatpush3.bf16.msra.mxu0 %v578_v45  ;;  %598 = vmatpush3.bf16.msra.mxu1 %v578_v45 }
  0x73   : > { %581 = vmatprep.subr.bf16.mxu0 %v580_v46  ;;  %591 = vmatprep.subr.bf16.mxu1 %v580_v46 }
  0x76   : > { %583 = vmatpush3.bf16.msra.mxu0 %v582_v49  ;;  %599 = vmatpush3.bf16.msra.mxu1 %v582_v49 }
  0x79   : > { %339 = vmatmul.mubr.f32.vlgmr.msra.gmra.mrb[0].mxu0 %v234_v50  ;;  %349 = vmatmul.mubr.f32.vlgmr.msra.gmra.mrb[0].mxu1 %v238_v51 }
  0x7a   : > { %343 = vmatprep.mubr.f32.mxu0 %v237_v52  ;;  %353 = vmatprep.mubr.f32.mxu1 %v241_v53 }
  0x7d   : > { %344 = vmatmul.mubr.f32.gmra.mrb[2].mxu0 %v236_v54  ;;  %354 = vmatmul.mubr.f32.gmra.mrb[2].mxu1 %v240_v55 }
 0x14c   : > { %v540_v56 = vpop.f32.mrb[0].mxu0  ;;  %v546_v57 = vpop.f32.mrb[0].mxu1 }
 0x14d   : > { %v541_v58 = vpop.f32.mrb[1].mxu0  ;;  %v547_v60 = vpop.f32.mrb[1].mxu1 }
 0x14e   : > { %v542_v61 = vadd.f32 %v541_v58, %v540_v56  ;;  %v548_v62 = vadd.f32 %v547_v60, %v546_v57 }
 0x150   : > { %v366_v0 = vmul.f32 %v542_v61, %v498_v59  ;;  %v368_v1 = vmul.f32 %v548_v62, %v498_v59  ;;  %v543_v2 = vpop.f32.mrb[2].mxu0  ;;  %v549_v3 = vpop.f32.mrb[2].mxu1 }
 0x151   : > { %v544_v4 = vpop.f32.mrb[3].mxu0  ;;  %v550_v5 = vpop.f32.mrb[3].mxu1 }
 0x152   : > { %v377_v6 = vadd.f32 %v499_v63, %v366_v0  ;;  %v379_v7 = vadd.f32 %v499_v63, %v368_v1  ;;  %v545_v8 = vadd.f32 %v544_v4, %v543_v2  ;;  %v551_v9 = vadd.f32 %v550_v5, %v549_v3 }
 0x154   : > { %v381_v10 = vmax.f32 %v377_v6, 0.0  ;;  %v383_v11 = vmax.f32 %v379_v7, 0.0  ;;  %v367_v12 = vmul.f32 %v545_v8, %v498_v59  ;;  %v369_v13 = vmul.f32 %v551_v9, %v498_v59 }
 0x156   : > { %385 = vst [vmem:[%s231_s10] sm:$0xff] %v381_v10  ;;  %387 = vst [vmem:[%s231_s10 + $0x10] sm:$0xff] %v383_v11  ;;  %v378_v14 = vadd.f32 %v499_v63, %v367_v12  ;;  %v380_v15 = vadd.f32 %v499_v63, %v369_v13 }
 0x158   : > { %v382_v16 = vmax.f32 %v378_v14, 0.0  ;;  %v384_v17 = vmax.f32 %v380_v15, 0.0 }
 0x15a   : > { %386 = vst [vmem:[%s231_s10 + $0x8] sm:$0xff] %v382_v16  ;;  %388 = vst [vmem:[%s231_s10 + $0x18] sm:$0xff] %v384_v17 }
 0x15b   : > { %734 = shalt.err (!%p731_p7)
}
 0x15c   : > { %s735_s20 = scalar_lea.hbm %s1001_s8, 512  ;;  %s739_s9 = scalar_lea.hbm %s1049_s4, 1024 }
 0x15d   : > { %p736_p9 = scmp.ne.s32.totalorder %s1001_s8, %s735_s20  ;;  %p740_p5 = scmp.lt.u32.totalorder %s1001_s8, %s1049_s4 }
 0x15e   : > { %p741_p11 = scmp.lt.u32.totalorder %s739_s9, %s735_s20  ;;  %p743_p4 = scmp.lt.u32.totalorder %s735_s20, %s1001_s8 }
 0x15f   : > { %p737_p2 = pnand %p736_p9, %p918_p12 }
 0x160   : > { %p742_p1 = por %p741_p11, %p740_p5 }
 0x161   : > { %p738_p0 = pneg %p737_p2 }
 0x162   : > { %p744_p6 = por %p743_p4, %p742_p1 }
 0x164   : > { %p745_p8 = pnand %p744_p6, %p738_p0 }
 0x166   : > { %748 = shalt.err (!%p745_p8)
}
 0x167   : > { %s800_s10 = smov 128   ;;  %s801_s5 = smov 8  }
 0x168   : > { %606 = dma.vmem_to_hbm [thread:$0]  (%p918_p12), %s996_s6, 512, %s1001_s8, %s390_s25, %s800_s10, %s800_s10, %s801_s5  }
 0x169 PF: > { %s418_s7 = sand.u32 1, %s779_s15   ;;  %p1064_p10 = scmp.ne.s32.totalorder %s1054_s22, 0 }
 0x16a   : > { %p1065_p13 = scmp.ge.s32.totalorder %s791_s18, 2  ;;  %s419_s26 = scalar_lea.sflag [#allocation4], %s418_s7 }
 0x16c   : > { %p617_p3 = pnand %p1065_p13, %p1064_p10 }
 0x16e   : > { %774 = dma.done.wait (!%p617_p3), %s419_s26, 512  }
 0x16f   : > { %776 = vsyncadd (!%p617_p3), %s419_s26, 4294966784  ;;  %p18_p7 = scmp.ge.s32.totalorder %s883_s27, 4   ;;  %s1066_s15 = smov %s783_s16 }
 0x170   : > { %s1067_s16 = smov %s787_s17  ;;  %s1068_s17 = smov %s914_s24 }
 0x171   : > { %s1069_s18 = smov %s883_s27  ;;  %20 = sbr.rel (!%p18_p7) target bundleno = 6 (0x6), region = 85 }
 0x178   :  { %424 = vsyncpa [#allocation3], 1 }
 0x179   :  { %426 = vsyncpa [#allocation3 + $0x1], 1 }
 0x17a   :  { %427 = vsyncpa [#allocation6], 1 }
 0x17b   :  { %428 = vsyncpa [#allocation4], 1 }
 0x17c   :  { %430 = vsyncpa [#allocation4 + $0x1], 1 }

</bundles_post_ra>
